<compile_context>
chip_gen: v5e
topology: v5e:2x2
jax: 0.10.0
libtpu: 0.0.40
codegen_flags: <defaults>
</compile_context>

<pallas_src>
import jax
import jax.numpy as jnp
from jax.experimental import pallas as pl
from jax.experimental.pallas import tpu as pltpu


_LANE = 1024           # lane-dense last dim: 8 full vregs per row, multiple of 128
_TILE_ROWS_F32 = 1024  # 1024 * 1024 * 4 B = 4 MiB per f32 buffer (v7x-safe baseline)


def _relu_sigmoid_kernel(x_ref, sig_ref, relu_ref):
    x = x_ref[...]
    xf = x.astype(jnp.float32)
    # Exact sigmoid; exp issues on the EUP slot, divide on the VPU — both trivially
    # hidden under the HBM DMA for this memory-bound kernel.
    sig = 1.0 / (1.0 + jnp.exp(-xf))
    sig_ref[...] = sig.astype(sig_ref.dtype)
    relu_ref[...] = jnp.maximum(x, 0)


_VMEM_CAP_CACHE = [None]


def _vmem_capacity_bytes():
    """Physical VMEM of the local TPU; conservative 64 MiB (v7x) on any failure."""
    if _VMEM_CAP_CACHE[0] is None:
        cap = 64 * 1024 * 1024
        try:
            info = pltpu.get_tpu_info()
            cap = int(getattr(info, "vmem_capacity_bytes", cap))
        except Exception:
            pass
        _VMEM_CAP_CACHE[0] = cap
    return _VMEM_CAP_CACHE[0]


def _pick_tile_rows(rows, itemsize):
    """Row count per block: dtype-aware (keep ~4-8 MiB/buffer), generation-aware
    (bigger on 128-MiB-VMEM v5e/v6e), and small enough that mid-size inputs get
    >= ~4 grid steps (pipelining + v7x megacore)."""
    base = _TILE_ROWS_F32 * max(1, 4 // int(itemsize))     # 4 MiB per buffer
    if _vmem_capacity_bytes() >= 100 * 1024 * 1024:        # v5e / v6e: 128 MiB VMEM
        base *= 2                                          # 8 MiB per buffer
    if rows <= 8:
        # Block shape == full array dims: always legal, single step is unavoidable.
        return rows
    quarter = -(-rows // 4)                                # aim for ~4 grid steps
    quarter = -(-quarter // 8) * 8                         # keep sublane-aligned
    return max(8, min(base, quarter))


def _run_kernel(x2d):
    rows, lane = x2d.shape
    dtype = x2d.dtype
    itemsize = jnp.dtype(dtype).itemsize

    tile_rows = _pick_tile_rows(rows, itemsize)
    grid = ((rows + tile_rows - 1) // tile_rows,)          # partial last block OK

    block = pl.BlockSpec((tile_rows, lane), lambda i: (i, 0))
    out_sd = jax.ShapeDtypeStruct((rows, lane), dtype)

    # 1 input + 2 outputs, double-buffered by the Pallas pipeline.
    live_bytes = 3 * 2 * tile_rows * lane * itemsize
    vmem_limit = max(32 * 1024 * 1024,
                     min(live_bytes + 16 * 1024 * 1024, 100 * 1024 * 1024))

    n_elems = rows * lane
    cost = pl.CostEstimate(flops=2 * n_elems,
                           transcendentals=n_elems,
                           bytes_accessed=3 * n_elems * itemsize)

    return pl.pallas_call(
        _relu_sigmoid_kernel,
        out_shape=(out_sd, out_sd),
        grid=grid,
        in_specs=[block],
        out_specs=(block, block),
        compiler_params=pltpu.CompilerParams(
            # Independent tiles -> v7x shards grid steps across its two TensorCores;
            # harmless on single-core v5e/v6e.
            dimension_semantics=("parallel",),
            vmem_limit_bytes=int(vmem_limit),
        ),
        cost_estimate=cost,
    )(x2d)


def relu1_forward(x):
    """x: any shape (e.g. NCHW). Returns (sigmoid(x), relu(x)), same shape/dtype,
    matching RELU1.forward: (Sigmoid()(input), ReLU()(input))."""
    orig_shape = x.shape
    dtype = x.dtype
    n = x.size
    flat = x.reshape(-1)

    n_main = (n // _LANE) * _LANE      # lane-aligned prefix handled by the kernel
    rem = n - n_main                   # < 1024-element tail handled in plain jnp

    sig_parts, relu_parts = [], []

    if n_main > 0:
        rows = n_main // _LANE
        main = flat if rem == 0 else flat[:n_main]
        x2d = main.reshape(rows, _LANE)
        sig2d, relu2d = _run_kernel(x2d)
        sig_parts.append(sig2d.reshape(-1))
        relu_parts.append(relu2d.reshape(-1))

    if rem > 0:
        # Cheaper than a full-array pad + 2x output unpad round trip through HBM.
        tail = flat[n_main:]
        tf = tail.astype(jnp.float32)
        sig_parts.append((1.0 / (1.0 + jnp.exp(-tf))).astype(dtype))
        relu_parts.append(jnp.maximum(tail, 0))

    sig = sig_parts[0] if len(sig_parts) == 1 else jnp.concatenate(sig_parts)
    relu = relu_parts[0] if len(relu_parts) == 1 else jnp.concatenate(relu_parts)
    return sig.reshape(orig_shape), relu.reshape(orig_shape)


def _check(x):
    sig, relu = relu1_forward(x)
    jax.block_until_ready((sig, relu))
    ref_sig = jax.nn.sigmoid(x.astype(jnp.float32)).astype(x.dtype)
    ref_relu = jnp.maximum(x, 0)
    assert sig.shape == x.shape and relu.shape == x.shape
    assert jnp.allclose(sig, ref_sig, atol=1e-5), "sigmoid mismatch"
    assert jnp.allclose(relu, ref_relu), "relu mismatch"


if __name__ == "__main__":
    key = jax.random.PRNGKey(0)
    k1, k2, k3, k4 = jax.random.split(key, 4)

    # Primary small NCHW input (size multiple of 1024 -> pure kernel path).
    x = jax.random.normal(key, (2, 4, 16, 16), dtype=jnp.float32)
    _check(x)

    # Tiny odd size (< one lane row) -> plain-jnp tail path only.
    x_odd = jax.random.normal(k1, (2, 3, 5, 7), dtype=jnp.float32)
    _check(x_odd)

    # Kernel prefix + jnp tail + concatenate path (1155 elements).
    x_mix = jax.random.normal(k2, (3, 5, 7, 11), dtype=jnp.float32)
    _check(x_mix)

    # Rows not a multiple of the tile -> partial final block (masked writes).
    x_part = jax.random.normal(k3, (2, 4, 40, 96), dtype=jnp.float32)
    _check(x_part)

    # Larger input -> multi-step pipelined grid (megacore-shardable on v7x).
    x_big = jax.random.normal(k4, (8, 16, 64, 128), dtype=jnp.float32)
    _check(x_big)

    print("KERNEL_OK")
</pallas_src>

<mosaic_0001>
module attributes {stable_mosaic.version = 11 : i64} {
  func.func @_relu_sigmoid_kernel(%arg0: i32, %arg1: memref<2x1024xf32, #tpu.memory_space<vmem>>, %arg2: memref<2x1024xf32, #tpu.memory_space<vmem>>, %arg3: memref<2x1024xf32, #tpu.memory_space<vmem>>) attributes {dimension_semantics = [#tpu.dimension_semantics<parallel>], iteration_bounds = array<i64: 1>, scalar_prefetch = 0 : i64, scratch_operands = 0 : i64, tpu.core_type = #tpu.core_type<tc>, window_params = [{transform_indices = @transform_0, window_bounds = array<i64: 2, 1024>}, {transform_indices = @transform_1, window_bounds = array<i64: 2, 1024>}, {transform_indices = @transform_2, window_bounds = array<i64: 2, 1024>}]} {
    %c0 = arith.constant 0 : index
    %c0_0 = arith.constant 0 : index
    %0 = vector.load %arg1[%c0, %c0_0] : memref<2x1024xf32, #tpu.memory_space<vmem>>, vector<2x1024xf32>
    %cst = arith.constant 0.000000e+00 : f32
    %1 = vector.broadcast %cst : f32 to vector<2x1024xf32>
    %2 = arith.subf %1, %0 : vector<2x1024xf32>
    %3 = math.exp %2 : vector<2x1024xf32>
    %cst_1 = arith.constant 1.000000e+00 : f32
    %4 = vector.broadcast %cst_1 : f32 to vector<2x1024xf32>
    %5 = arith.addf %4, %3 : vector<2x1024xf32>
    %cst_2 = arith.constant 1.000000e+00 : f32
    %6 = vector.broadcast %cst_2 : f32 to vector<2x1024xf32>
    %7 = arith.divf %6, %5 : vector<2x1024xf32>
    %c0_3 = arith.constant 0 : index
    %c0_4 = arith.constant 0 : index
    %8 = vector.load %arg2[%c0_3, %c0_4] : memref<2x1024xf32, #tpu.memory_space<vmem>>, vector<2x1024xf32>
    tpu.vector_store %arg2[%c0_3, %c0_4], %7 {strides = array<i32>} : memref<2x1024xf32, #tpu.memory_space<vmem>>, vector<2x1024xf32>,
    %cst_5 = arith.constant 0.000000e+00 : f32
    %9 = vector.broadcast %cst_5 : f32 to vector<2x1024xf32>
    %10 = arith.maximumf %0, %9 : vector<2x1024xf32>
    %c0_6 = arith.constant 0 : index
    %c0_7 = arith.constant 0 : index
    %11 = vector.load %arg3[%c0_6, %c0_7] : memref<2x1024xf32, #tpu.memory_space<vmem>>, vector<2x1024xf32>
    tpu.vector_store %arg3[%c0_6, %c0_7], %10 {strides = array<i32>} : memref<2x1024xf32, #tpu.memory_space<vmem>>, vector<2x1024xf32>,
    return
  }
  func.func @transform_0(%arg0: i32) -> (i32, i32) {
    %c0_i32 = arith.constant 0 : i32
    %c0_i32_0 = arith.constant 0 : i32
    return %arg0, %c0_i32 : i32, i32
  }
  func.func @transform_1(%arg0: i32) -> (i32, i32) {
    %c0_i32 = arith.constant 0 : i32
    %c0_i32_0 = arith.constant 0 : i32
    return %arg0, %c0_i32 : i32, i32
  }
  func.func @transform_2(%arg0: i32) -> (i32, i32) {
    %c0_i32 = arith.constant 0 : i32
    %c0_i32_0 = arith.constant 0 : i32
    return %arg0, %c0_i32 : i32, i32
  }
}

</mosaic_0001>

<bundles_post_ra>
// kernel: tpu_custom_call.1
= control target key start
LH: loop header
LB: loop body
LE: loop exit
PB: predicated region body
PF: predicated region fallthrough
CT: control target
= control target key end

     0   :  { %8 = vsyncpa [#allocation3], 0  ;;  %s221_s0 = inlined_call_operand.hbm [shape: f32[2,1024], index: 0, kind: input, shape index: {}]   ;;  %s222_s1 = inlined_call_operand.hbm [shape: f32[2,1024], index: 1, kind: output, shape index: {0}]   ;;  %s223_s2 = inlined_call_operand.hbm [shape: f32[2,1024], index: 2, kind: output, shape index: {1}]  }
   0x1   :  { %9 = vsyncpa [#allocation4], 0 }
   0x2   :  { %10 = vsyncpa [#allocation7], 0  ;;  %s16_s11 = sshll.u32 %s221_s0, 4  ;;  %s194_s12 = smov [#allocation2]   ;;  %s17_s11 = int_to_ptr.hbm [resolvable:$true] %s16_s11 }
   0x3   :  { %s18_s13 = sshll.u32 %s194_s12, 4  ;;  %s19_s13 = int_to_ptr.vmem [resolvable:$true] %s18_s13 }
   0x4   :  { %21 = dma.hbm_to_vmem [thread:$0]  %s17_s11, 256, %s19_s13, [#allocation3]  }
   0x5   :  { %188 = dma.done.wait [#allocation3], 256  }
   0x6   :  { %189 = vsyncadd [#allocation3], 4294967040  ;;  %s195_s14 = smov [#allocation6]   ;;  %s90_s18 = sshll.u32 %s223_s2, 4  ;;  %v26_v0 = vld [vmem:[#allocation2] sm:$0xff]  ;;  %v27_v1 = vld [vmem:[#allocation2 + $0x8] sm:$0xff]  ;;  %s91_s18 = int_to_ptr.hbm [resolvable:$true] %s90_s18 }
   0x7   :  { %s88_s15 = sshll.u32 %s195_s14, 4  ;;  %v28_v2 = vsub.f32 0.0, %v26_v0  ;;  %v29_v3 = vsub.f32 0.0, %v27_v1  ;;  %v68_v4 = vmax.f32 %v26_v0, 0.0  ;;  %v69_v5 = vmax.f32 %v27_v1, 0.0  ;;  %s196_s0 = smov [#allocation5]   ;;  %s89_s15 = int_to_ptr.vmem [resolvable:$true] %s88_s15 }
   0x8   :  { %s77_s2 = sshll.u32 %s196_s0, 4  ;;  %s79_s21 = sshll.u32 %s222_s1, 4  ;;  %s78_s2 = int_to_ptr.vmem [resolvable:$true] %s77_s2  ;;  %s80_s21 = int_to_ptr.hbm [resolvable:$true] %s79_s21 }
   0x9   :  { %v30_v6 = vmul.f32 1.442695, %v28_v2  ;;  %v32_v7 = vmul.f32 1.442695, %v29_v3  ;;  %70 = vst [vmem:[#allocation6] sm:$0xff] %v68_v4 }
   0xa   :  { %71 = vst [vmem:[#allocation6 + $0x8] sm:$0xff] %v69_v5 }
   0xb   :  { %108 = vpow2.f32 %v30_v6  ;;  %93 = dma.vmem_to_hbm [thread:$0]  %s89_s15, 256, %s91_s18, [#allocation7]  }
   0xc   :  { %110 = vpow2.f32 %v32_v7 }
  0x11   :  { %v109_v8 = vpop.eup %108 }
  0x12   :  { %v111_v9 = vpop.eup %110  ;;  %v34_v10 = vadd.f32 1.0, %v109_v8 }
  0x13   :  { %v35_v11 = vadd.f32 1.0, %v111_v9 }
  0x14   :  { %112 = vrcp.f32 %v34_v10  ;;  %vm41_vm0 = vweird.f32 %v34_v10  ;;  %v47_v15 = vand.u32 2147483648, %v34_v10  ;;  %v45_v18 = vand.u32 2147483647, %v34_v10 }
  0x15   :  { %114 = vrcp.f32 %v35_v11  ;;  %v62_v19 = vand.u32 2147483648, %v35_v11  ;;  %vm56_vm2 = vweird.f32 %v35_v11  ;;  %v60_v21 = vand.u32 2147483647, %v35_v11 }
  0x16   :  { %v48_v23 = vor.u32 1.1754944e-38, %v47_v15  ;;  %vm46_vm5 = vcmp.eq.f32.partialorder %v45_v18, 8.507059e+37 }
  0x17   :  { %v63_v26 = vor.u32 1.1754944e-38, %v62_v19  ;;  %vm61_vm7 = vcmp.eq.f32.partialorder %v60_v21, 8.507059e+37 }
  0x1a   :  { %v113_v12 = vpop.eup %112 }
  0x1b   :  { %v115_v13 = vpop.eup %114  ;;  %v37_v14 = vmul.f32 %v113_v12, %v34_v10  ;;  %vm42_vm1 = vweird.f32 %v113_v12 }
  0x1c   :  { %v52_v16 = vmul.f32 %v115_v13, %v35_v11  ;;  %vm57_vm3 = vweird.f32 %v115_v13  ;;  %vm43_vm4 = vmor %vm41_vm0, %vm42_vm1 }
  0x1d   :  { %v38_v17 = vsub.f32 1.0, %v37_v14  ;;  %vm58_vm6 = vmor %vm56_vm2, %vm57_vm3 }
  0x1e   :  { %v53_v20 = vsub.f32 1.0, %v52_v16 }
  0x1f   :  { %v39_v22 = vmul.f32 %v113_v12, %v38_v17 }
  0x20   :  { %v54_v24 = vmul.f32 %v115_v13, %v53_v20 }
  0x21   :  { %v40_v25 = vadd.f32 %v113_v12, %v39_v22 }
  0x22   :  { %v55_v27 = vadd.f32 %v115_v13, %v54_v24 }
  0x23   :  { %v44_v28 = vsel %vm43_vm4, %v113_v12, %v40_v25 }
  0x24   :  { %v49_v29 = vsel %vm46_vm5, %v48_v23, %v44_v28  ;;  %v59_v30 = vsel %vm58_vm6, %v115_v13, %v55_v27 }
  0x25   :  { %66 = vst [vmem:[#allocation5] sm:$0xff] %v49_v29  ;;  %v64_v31 = vsel %vm61_vm7, %v63_v26, %v59_v30 }
  0x26   :  { %67 = vst [vmem:[#allocation5 + $0x8] sm:$0xff] %v64_v31 }
  0x27   :  { %82 = dma.vmem_to_hbm [thread:$0]  %s78_s2, 256, %s80_s21, [#allocation4]  }
  0x28   :  { %190 = dma.done.wait [#allocation4], 256  }
  0x29   :  { %191 = vsyncadd [#allocation4], 4294967040 }
  0x2a   :  { %192 = dma.done.wait [#allocation7], 256  }
  0x2b   :  { %193 = vsyncadd [#allocation7], 4294967040 }
  0x2c   :  { %102 = vsyncpa [#allocation3], 1 }
  0x2d   :  { %103 = vsyncpa [#allocation4], 1 }
  0x2e   :  { %104 = vsyncpa [#allocation7], 1 }

</bundles_post_ra>
